<compile_context>
chip_gen: v6e
topology: v6e:2x2x1
jax: 0.10.0
libtpu: 0.0.40
codegen_flags: <defaults>
</compile_context>

<pallas_src>
import functools

import jax
import jax.numpy as jnp
from jax.experimental import pallas as pl
from jax.experimental.pallas import tpu as pltpu


def _round_up(n, m):
    return ((n + m - 1) // m) * m


def _vmem_capacity_bytes():
    """Per-core VMEM capacity; conservative 64 MiB (v7x) if undetectable."""
    try:
        info = pltpu.get_tpu_info()
        cap = getattr(info, "vmem_capacity_bytes", None)
        if cap:
            return int(cap)
    except Exception:
        pass
    return 64 * 1024 * 1024


def _sublayer_connection_kernel(x_ref, a2_ref, b2_ref, w_ref, bias_ref, o_ref,
                                *, eps, h, hp, tn, mxu_dtype, approx_recip):
    """One (TM, TN) output tile of x + Linear(LayerNorm(x)) (dropout = identity).

    x_ref is the full-hidden (TM, Hp) row tile; w_ref is the (Hp, TN) column
    tile of the weight (TN == Hp when the weight is fully VMEM-resident).
    """
    j = pl.program_id(1)

    # ---- LayerNorm (pre-norm), torch semantics: unbiased std, (std + eps). ----
    x = x_ref[...].astype(jnp.float32)                        # (TM, Hp)
    mean = jnp.sum(x, axis=-1, keepdims=True) * (1.0 / h)     # padded lanes are 0
    xc = x - mean
    if hp != h:
        # Zero padded hidden lanes so the two-pass variance is exact.
        lane = jax.lax.broadcasted_iota(jnp.int32, xc.shape, 1)
        xc_ss = jnp.where(lane < h, xc, 0.0)
    else:
        xc_ss = xc
    denom = float(max(h - 1, 1))                               # ddof=1 (H==1 guarded)
    var = jnp.sum(xc_ss * xc_ss, axis=-1, keepdims=True) * (1.0 / denom)
    std = jnp.sqrt(var)
    inv = pl.reciprocal(std + eps, approx=approx_recip)        # EUP slot
    normed = a2_ref[...] * (xc * inv) + b2_ref[...]            # (TM, Hp), f32

    # ---- sublayer: Linear(H -> H) column tile on the MXU, f32 accumulate. ----
    # W was cast host-side (bf16 by default); only the activations cast here.
    y = jnp.dot(normed.astype(mxu_dtype), w_ref[...],
                preferred_element_type=jnp.float32)            # (TM, TN)
    y = y + bias_ref[...]

    # ---- dropout (inference-mode identity) + residual add. ----
    # Re-read the residual slice from VMEM instead of keeping the full f32
    # copy of x live across the matmul.
    if tn == hp:
        res = x_ref[...]
    else:
        col0 = pl.multiple_of(j * tn, 128)
        res = x_ref[:, pl.ds(col0, tn)]
    o_ref[...] = (res.astype(jnp.float32) + y).astype(o_ref.dtype)


def sublayer_connection(x, a2, b2, w, bias, *, eps=1e-6,
                        mxu_dtype=jnp.bfloat16, approx_reciprocal=True,
                        tm=None, tn=None, vmem_limit_bytes=None):
    """x: (B, S, H). Returns x + Linear(LayerNorm(x)), torch.std semantics.

    Default is bf16 MXU operands with f32 accumulation (LayerNorm in f32);
    pass mxu_dtype=jnp.float32 / approx_reciprocal=False for bit-level parity
    with an f32 reference.
    """
    B, S, H = x.shape
    R = B * S
    out_dtype = x.dtype

    Hp = _round_up(H, 128)
    in_sz = jnp.dtype(x.dtype).itemsize
    out_sz = jnp.dtype(out_dtype).itemsize
    w_sz = jnp.dtype(mxu_dtype).itemsize

    cap = _vmem_capacity_bytes()
    budget = int(cap * 0.85)
    params_bytes = 3 * Hp * 4 + 1024

    # --- Weight residency: fully resident when it comfortably fits the
    #     per-core VMEM budget (v5e/v6e); otherwise stream (Hp, tn) column
    #     tiles (v7x 64 MiB with large H).
    if tn is None:
        if Hp * Hp * w_sz <= int(0.4 * cap):
            tn = Hp
        else:
            budget_w = max(int(0.2 * cap), 2 * Hp * 128 * w_sz)
            tn = 128
            for k in range(1, Hp // 128 + 1):   # largest divisor of Hp first
                cand = Hp // k
                if Hp % k == 0 and cand % 128 == 0 and 2 * Hp * cand * w_sz <= budget_w:
                    tn = cand
                    break
    col_tiled = tn < Hp
    n_cols = Hp // tn
    w_resident = (2 * Hp * tn * w_sz) if col_tiled else (Hp * Hp * w_sz)

    # --- Row tile from the remaining VMEM budget (double-buffered x/out tiles
    #     + live f32 intermediates), chip-aware cap.
    if tm is None:
        per_row = Hp * (2 * in_sz + 2 * out_sz + 3 * 4)
        avail = max(budget - w_resident - params_bytes, 8 * per_row)
        tm_fit = max(8, (avail // per_row) // 8 * 8)
        tm_cap = 1024 if cap >= 96 * (1 << 20) else 512
        tm = min(tm_cap, tm_fit, _round_up(R, 8))
        # v7x has 2 TCs sharing "parallel" grid axes: if one row tile would
        # cover every row (and there is no column axis), split it in two.
        if n_cols == 1 and tm >= 16 and _round_up(R, tm) == tm:
            tm = _round_up((R + 1) // 2, 8)
    tm = max(8, _round_up(int(tm), 8))
    Rp = _round_up(R, tm)
    n_rows = Rp // tm

    # --- Pad only when actually needed (no extra HBM round trip for the
    #     common H % 128 == 0, R % tm == 0 transformer case).
    x2 = x.reshape(R, H)
    if Hp != H:
        x2 = jnp.pad(x2, ((0, 0), (0, Hp - H)))
        a2p = jnp.pad(a2.astype(jnp.float32), (0, Hp - H)).reshape(1, Hp)
        b2p = jnp.pad(b2.astype(jnp.float32), (0, Hp - H)).reshape(1, Hp)
        biasp = jnp.pad(bias.astype(jnp.float32), (0, Hp - H)).reshape(1, Hp)
        wp = jnp.pad(w, ((0, Hp - H), (0, Hp - H)))
    else:
        a2p = a2.astype(jnp.float32).reshape(1, Hp)
        b2p = b2.astype(jnp.float32).reshape(1, Hp)
        biasp = bias.astype(jnp.float32).reshape(1, Hp)
        wp = w
    wp = wp.astype(mxu_dtype)          # cast ONCE host-side (bf16 by default)
    if Rp != R:
        x2 = jnp.pad(x2, ((0, Rp - R), (0, 0)))

    # --- Explicit scoped-VMEM limit with headroom, clamped to capacity.
    if vmem_limit_bytes is None:
        tile_bytes = 2 * tm * Hp * in_sz + 2 * tm * tn * out_sz
        temp_bytes = 6 * tm * Hp * 4          # generous: kernel f32 intermediates
        vmem_limit_bytes = int(1.25 * (w_resident + params_bytes + tile_bytes
                                       + temp_bytes)) + (2 << 20)
        vmem_limit_bytes = min(max(vmem_limit_bytes, 32 << 20), cap)

    kernel = functools.partial(
        _sublayer_connection_kernel, eps=float(eps), h=int(H), hp=int(Hp),
        tn=int(tn), mxu_dtype=mxu_dtype, approx_recip=bool(approx_reciprocal))

    w_reads = n_rows if col_tiled else 1
    cost = pl.CostEstimate(
        flops=int(2 * Rp * Hp * Hp + 10 * Rp * Hp),
        transcendentals=int(2 * Rp * n_cols),
        bytes_accessed=int(Rp * Hp * in_sz + Rp * Hp * out_sz
                           + w_reads * Hp * Hp * w_sz + 4 * Hp * 4))

    def _build(single_buffer_consts):
        def const_spec(shape):
            if single_buffer_consts:
                return pl.BlockSpec(shape, lambda i, j: (0, 0),
                                    pipeline_mode=pl.Buffered(1))
            return pl.BlockSpec(shape, lambda i, j: (0, 0))

        in_specs = [
            pl.BlockSpec((tm, Hp), lambda i, j: (i, 0)),       # x: row tile
            const_spec((1, Hp)),                               # a_2 (resident)
            const_spec((1, Hp)),                               # b_2 (resident)
            (pl.BlockSpec((Hp, tn), lambda i, j: (0, j))       # W: streamed cols
             if col_tiled else const_spec((Hp, Hp))),          # W: resident
            (pl.BlockSpec((1, tn), lambda i, j: (0, j))
             if col_tiled else const_spec((1, Hp))),           # bias
        ]
        return pl.pallas_call(
            kernel,
            out_shape=jax.ShapeDtypeStruct((Rp, Hp), out_dtype),
            grid_spec=pl.GridSpec(
                grid=(n_rows, n_cols),
                in_specs=in_specs,
                out_specs=pl.BlockSpec((tm, tn), lambda i, j: (i, j))),
            compiler_params=pltpu.CompilerParams(
                dimension_semantics=("parallel", "parallel"),
                vmem_limit_bytes=int(vmem_limit_bytes)),
            cost_estimate=cost)

    try:
        out = _build(True)(x2, a2p, b2p, wp, biasp)
    except Exception:
        # TODO(synk): pl.Buffered(1) single-buffering of constant-index blocks
        # is a pure VMEM optimization; fall back to default double-buffering
        # if this jax/Mosaic build rejects it.
        out = _build(False)(x2, a2p, b2p, wp, biasp)

    if Rp != R or Hp != H:
        out = out[:R, :H]
    return out.reshape(B, S, H)


if __name__ == "__main__":
    B, S, H = 2, 8, 32
    key = jax.random.PRNGKey(0)
    kx, kw, kb = jax.random.split(key, 3)

    x = jax.random.normal(kx, (B, S, H), dtype=jnp.float32)

    # LayerNorm parameters, initialized as in the module (ones / zeros).
    a2 = jnp.ones((H,), dtype=jnp.float32)
    b2 = jnp.zeros((H,), dtype=jnp.float32)

    # Deterministic synthetic sublayer (Linear H->H) parameters.
    w = jax.random.normal(kw, (H, H), dtype=jnp.float32) * 0.05
    bias = jax.random.normal(kb, (H,), dtype=jnp.float32) * 0.05

    eps = 1e-6

    def reference(xv, matmul_dtype):
        mean = jnp.mean(xv, axis=-1, keepdims=True)
        xc = xv - mean
        std = jnp.sqrt(jnp.sum(xc * xc, axis=-1, keepdims=True) / (H - 1))
        normed = a2 * xc / (std + eps) + b2
        y = jnp.dot(normed.astype(matmul_dtype), w.astype(matmul_dtype),
                    preferred_element_type=jnp.float32) + bias
        return xv + y

    # 1) Exact-parity path: f32 MXU operands + exact reciprocal, tight tolerance.
    out_f32 = sublayer_connection(x, a2, b2, w, bias, eps=eps,
                                  mxu_dtype=jnp.float32,
                                  approx_reciprocal=False)
    jax.block_until_ready(out_f32)
    ref_f32 = reference(x, jnp.float32)
    assert out_f32.shape == (B, S, H)
    assert jnp.allclose(out_f32, ref_f32, atol=1e-4, rtol=1e-4), \
        "f32 path mismatch vs reference"

    # 2) Production default: bf16 MXU operands (f32 accumulate) + approx recip.
    #    Compared against a bf16-matmul reference at bf16-appropriate tolerance.
    out_bf16 = sublayer_connection(x, a2, b2, w, bias, eps=eps)
    jax.block_until_ready(out_bf16)
    ref_bf16 = reference(x, jnp.bfloat16)
    assert jnp.allclose(out_bf16, ref_bf16, atol=1e-2, rtol=1e-2), \
        "bf16 path mismatch vs bf16 reference"

    print("KERNEL_OK")
</pallas_src>

<mosaic_0001>
module attributes {stable_mosaic.version = 11 : i64} {
  func.func @_sublayer_connection_kernel(%arg0: i32, %arg1: i32, %arg2: memref<8x128xf32, #tpu.memory_space<vmem>>, %arg3: memref<1x128xf32, #tpu.memory_space<vmem>>, %arg4: memref<1x128xf32, #tpu.memory_space<vmem>>, %arg5: memref<128x128xf32, #tpu.memory_space<vmem>>, %arg6: memref<1x128xf32, #tpu.memory_space<vmem>>, %arg7: memref<8x128xf32, #tpu.memory_space<vmem>>) attributes {dimension_semantics = [#tpu.dimension_semantics<parallel>, #tpu.dimension_semantics<parallel>], iteration_bounds = array<i64: 2, 1>, scalar_prefetch = 0 : i64, scratch_operands = 0 : i64, tpu.core_type = #tpu.core_type<tc>, window_params = [{transform_indices = @transform_0, window_bounds = array<i64: 8, 128>}, {pipeline_mode = #tpu.pipeline_mode<synchronous>, transform_indices = @transform_1, window_bounds = array<i64: 1, 128>}, {pipeline_mode = #tpu.pipeline_mode<synchronous>, transform_indices = @transform_2, window_bounds = array<i64: 1, 128>}, {pipeline_mode = #tpu.pipeline_mode<synchronous>, transform_indices = @transform_3, window_bounds = array<i64: 128, 128>}, {pipeline_mode = #tpu.pipeline_mode<synchronous>, transform_indices = @transform_4, window_bounds = array<i64: 1, 128>}, {transform_indices = @transform_5, window_bounds = array<i64: 8, 128>}]} {
    %c0 = arith.constant 0 : index
    %c0_0 = arith.constant 0 : index
    %0 = vector.load %arg2[%c0, %c0_0] : memref<8x128xf32, #tpu.memory_space<vmem>>, vector<8x128xf32>
    %cst = arith.constant dense<0.000000e+00> : vector<8xf32>
    %1 = vector.multi_reduction <add>, %0, %cst [1] : vector<8x128xf32> to vector<8xf32>
    %2 = vector.shape_cast %1 : vector<8xf32> to vector<8x1xf32>
    %cst_1 = arith.constant 3.125000e-02 : f32
    %3 = vector.broadcast %cst_1 : f32 to vector<8x1xf32>
    %4 = arith.mulf %2, %3 : vector<8x1xf32>
    %5 = vector.broadcast %4 : vector<8x1xf32> to vector<8x128xf32>
    %6 = arith.subf %0, %5 : vector<8x128xf32>
    %7 = tpu.iota {dimensions = array<i32: 1>} : vector<8x128xi32>
    %c32_i32 = arith.constant 32 : i32
    %8 = vector.broadcast %c32_i32 : i32 to vector<8x128xi32>
    %9 = arith.cmpi slt, %7, %8 : vector<8x128xi32>
    %cst_2 = arith.constant 0.000000e+00 : f32
    %10 = vector.broadcast %cst_2 : f32 to vector<8x128xf32>
    %11 = arith.select %9, %6, %10 : vector<8x128xi1>, vector<8x128xf32>
    %12 = arith.mulf %11, %11 : vector<8x128xf32>
    %cst_3 = arith.constant dense<0.000000e+00> : vector<8xf32>
    %13 = vector.multi_reduction <add>, %12, %cst_3 [1] : vector<8x128xf32> to vector<8xf32>
    %14 = vector.shape_cast %13 : vector<8xf32> to vector<8x1xf32>
    %cst_4 = arith.constant 0.0322580636 : f32
    %15 = vector.broadcast %cst_4 : f32 to vector<8x1xf32>
    %16 = arith.mulf %14, %15 : vector<8x1xf32>
    %17 = math.sqrt %16 : vector<8x1xf32>
    %cst_5 = arith.constant 9.99999997E-7 : f32
    %18 = vector.broadcast %cst_5 : f32 to vector<8x1xf32>
    %19 = arith.addf %17, %18 : vector<8x1xf32>
    %20 = tpu.reciprocal %19 : vector<8x1xf32> -> vector<8x1xf32>
    %c0_6 = arith.constant 0 : index
    %c0_7 = arith.constant 0 : index
    %21 = vector.load %arg3[%c0_6, %c0_7] : memref<1x128xf32, #tpu.memory_space<vmem>>, vector<1x128xf32>
    %22 = vector.broadcast %20 : vector<8x1xf32> to vector<8x128xf32>
    %23 = arith.mulf %6, %22 : vector<8x128xf32>
    %24 = vector.broadcast %21 : vector<1x128xf32> to vector<8x128xf32>
    %25 = arith.mulf %24, %23 : vector<8x128xf32>
    %c0_8 = arith.constant 0 : index
    %c0_9 = arith.constant 0 : index
    %26 = vector.load %arg4[%c0_8, %c0_9] : memref<1x128xf32, #tpu.memory_space<vmem>>, vector<1x128xf32>
    %27 = vector.broadcast %26 : vector<1x128xf32> to vector<8x128xf32>
    %28 = arith.addf %25, %27 : vector<8x128xf32>
    %c0_10 = arith.constant 0 : index
    %c0_11 = arith.constant 0 : index
    %29 = vector.load %arg5[%c0_10, %c0_11] : memref<128x128xf32, #tpu.memory_space<vmem>>, vector<128x128xf32>
    %cst_12 = arith.constant dense<0.000000e+00> : vector<8x128xf32>
    %30 = tpu.matmul %28, %29, %cst_12 {dimension_numbers = #tpu.dot_dimension_numbers<[1], [0], [0], [1], [0, 0, 1, 1], [], []>} : vector<8x128xf32>, vector<128x128xf32>, vector<8x128xf32> -> vector<8x128xf32>
    %c0_13 = arith.constant 0 : index
    %c0_14 = arith.constant 0 : index
    %31 = vector.load %arg6[%c0_13, %c0_14] : memref<1x128xf32, #tpu.memory_space<vmem>>, vector<1x128xf32>
    %32 = vector.broadcast %31 : vector<1x128xf32> to vector<8x128xf32>
    %33 = arith.addf %30, %32 : vector<8x128xf32>
    %c0_15 = arith.constant 0 : index
    %c0_16 = arith.constant 0 : index
    %34 = vector.load %arg2[%c0_15, %c0_16] : memref<8x128xf32, #tpu.memory_space<vmem>>, vector<8x128xf32>
    %35 = arith.addf %34, %33 : vector<8x128xf32>
    %c0_17 = arith.constant 0 : index
    %c0_18 = arith.constant 0 : index
    %36 = vector.load %arg7[%c0_17, %c0_18] : memref<8x128xf32, #tpu.memory_space<vmem>>, vector<8x128xf32>
    tpu.vector_store %arg7[%c0_17, %c0_18], %35 {strides = array<i32>} : memref<8x128xf32, #tpu.memory_space<vmem>>, vector<8x128xf32>,
    return
  }
  func.func @transform_0(%arg0: i32, %arg1: i32) -> (i32, i32) {
    %c0_i32 = arith.constant 0 : i32
    %c0_i32_0 = arith.constant 0 : i32
    return %arg0, %c0_i32 : i32, i32
  }
  func.func @transform_1(%arg0: i32, %arg1: i32) -> (i32, i32) {
    %c0_i32 = arith.constant 0 : i32
    %c0_i32_0 = arith.constant 0 : i32
    %c0_i32_1 = arith.constant 0 : i32
    return %c0_i32, %c0_i32_0 : i32, i32
  }
  func.func @transform_2(%arg0: i32, %arg1: i32) -> (i32, i32) {
    %c0_i32 = arith.constant 0 : i32
    %c0_i32_0 = arith.constant 0 : i32
    %c0_i32_1 = arith.constant 0 : i32
    return %c0_i32, %c0_i32_0 : i32, i32
  }
  func.func @transform_3(%arg0: i32, %arg1: i32) -> (i32, i32) {
    %c0_i32 = arith.constant 0 : i32
    %c0_i32_0 = arith.constant 0 : i32
    %c0_i32_1 = arith.constant 0 : i32
    return %c0_i32, %c0_i32_0 : i32, i32
  }
  func.func @transform_4(%arg0: i32, %arg1: i32) -> (i32, i32) {
    %c0_i32 = arith.constant 0 : i32
    %c0_i32_0 = arith.constant 0 : i32
    %c0_i32_1 = arith.constant 0 : i32
    return %c0_i32, %c0_i32_0 : i32, i32
  }
  func.func @transform_5(%arg0: i32, %arg1: i32) -> (i32, i32) {
    %c0_i32 = arith.constant 0 : i32
    return %arg0, %arg1 : i32, i32
  }
}

module attributes {stable_mosaic.version = 11 : i64} {
  func.func @_sublayer_connection_kernel(%arg0: i32, %arg1: i32, %arg2: memref<8x128xf32, #tpu.memory_space<vmem>>, %arg3: memref<1x128xf32, #tpu.memory_space<vmem>>, %arg4: memref<1x128xf32, #tpu.memory_space<vmem>>, %arg5: memref<128x128xf32, #tpu.memory_space<vmem>>, %arg6: memref<1x128xf32, #tpu.memory_space<vmem>>, %arg7: memref<8x128xf32, #tpu.memory_space<vmem>>) attributes {dimension_semantics = [#tpu.dimension_semantics<parallel>, #tpu.dimension_semantics<parallel>], iteration_bounds = array<i64: 2, 1>, scalar_prefetch = 0 : i64, scratch_operands = 0 : i64, tpu.core_type = #tpu.core_type<tc>, window_params = [{transform_indices = @transform_0, window_bounds = array<i64: 8, 128>}, {pipeline_mode = #tpu.pipeline_mode<synchronous>, transform_indices = @transform_1, window_bounds = array<i64: 1, 128>}, {pipeline_mode = #tpu.pipeline_mode<synchronous>, transform_indices = @transform_2, window_bounds = array<i64: 1, 128>}, {pipeline_mode = #tpu.pipeline_mode<synchronous>, transform_indices = @transform_3, window_bounds = array<i64: 128, 128>}, {pipeline_mode = #tpu.pipeline_mode<synchronous>, transform_indices = @transform_4, window_bounds = array<i64: 1, 128>}, {transform_indices = @transform_5, window_bounds = array<i64: 8, 128>}]} {
    %c0 = arith.constant 0 : index
    %c0_0 = arith.constant 0 : index
    %0 = vector.load %arg2[%c0, %c0_0] : memref<8x128xf32, #tpu.memory_space<vmem>>, vector<8x128xf32>
    %cst = arith.constant dense<0.000000e+00> : vector<8xf32>
    %1 = vector.multi_reduction <add>, %0, %cst [1] : vector<8x128xf32> to vector<8xf32>
    %2 = vector.shape_cast %1 : vector<8xf32> to vector<8x1xf32>
    %cst_1 = arith.constant 3.125000e-02 : f32
    %3 = vector.broadcast %cst_1 : f32 to vector<8x1xf32>
    %4 = arith.mulf %2, %3 : vector<8x1xf32>
    %5 = vector.broadcast %4 : vector<8x1xf32> to vector<8x128xf32>
    %6 = arith.subf %0, %5 : vector<8x128xf32>
    %7 = tpu.iota {dimensions = array<i32: 1>} : vector<8x128xi32>
    %c32_i32 = arith.constant 32 : i32
    %8 = vector.broadcast %c32_i32 : i32 to vector<8x128xi32>
    %9 = arith.cmpi slt, %7, %8 : vector<8x128xi32>
    %cst_2 = arith.constant 0.000000e+00 : f32
    %10 = vector.broadcast %cst_2 : f32 to vector<8x128xf32>
    %11 = arith.select %9, %6, %10 : vector<8x128xi1>, vector<8x128xf32>
    %12 = arith.mulf %11, %11 : vector<8x128xf32>
    %cst_3 = arith.constant dense<0.000000e+00> : vector<8xf32>
    %13 = vector.multi_reduction <add>, %12, %cst_3 [1] : vector<8x128xf32> to vector<8xf32>
    %14 = vector.shape_cast %13 : vector<8xf32> to vector<8x1xf32>
    %cst_4 = arith.constant 0.0322580636 : f32
    %15 = vector.broadcast %cst_4 : f32 to vector<8x1xf32>
    %16 = arith.mulf %14, %15 : vector<8x1xf32>
    %17 = math.sqrt %16 : vector<8x1xf32>
    %cst_5 = arith.constant 9.99999997E-7 : f32
    %18 = vector.broadcast %cst_5 : f32 to vector<8x1xf32>
    %19 = arith.addf %17, %18 : vector<8x1xf32>
    %20 = tpu.reciprocal %19 : vector<8x1xf32> -> vector<8x1xf32>
    %c0_6 = arith.constant 0 : index
    %c0_7 = arith.constant 0 : index
    %21 = vector.load %arg3[%c0_6, %c0_7] : memref<1x128xf32, #tpu.memory_space<vmem>>, vector<1x128xf32>
    %22 = vector.broadcast %20 : vector<8x1xf32> to vector<8x128xf32>
    %23 = arith.mulf %6, %22 : vector<8x128xf32>
    %24 = vector.broadcast %21 : vector<1x128xf32> to vector<8x128xf32>
    %25 = arith.mulf %24, %23 : vector<8x128xf32>
    %c0_8 = arith.constant 0 : index
    %c0_9 = arith.constant 0 : index
    %26 = vector.load %arg4[%c0_8, %c0_9] : memref<1x128xf32, #tpu.memory_space<vmem>>, vector<1x128xf32>
    %27 = vector.broadcast %26 : vector<1x128xf32> to vector<8x128xf32>
    %28 = arith.addf %25, %27 : vector<8x128xf32>
    %c0_10 = arith.constant 0 : index
    %c0_11 = arith.constant 0 : index
    %29 = vector.load %arg5[%c0_10, %c0_11] : memref<128x128xf32, #tpu.memory_space<vmem>>, vector<128x128xf32>
    %cst_12 = arith.constant dense<0.000000e+00> : vector<8x128xf32>
    %30 = tpu.matmul %28, %29, %cst_12 {dimension_numbers = #tpu.dot_dimension_numbers<[1], [0], [0], [1], [0, 0, 1, 1], [], []>} : vector<8x128xf32>, vector<128x128xf32>, vector<8x128xf32> -> vector<8x128xf32>
    %c0_13 = arith.constant 0 : index
    %c0_14 = arith.constant 0 : index
    %31 = vector.load %arg6[%c0_13, %c0_14] : memref<1x128xf32, #tpu.memory_space<vmem>>, vector<1x128xf32>
    %32 = vector.broadcast %31 : vector<1x128xf32> to vector<8x128xf32>
    %33 = arith.addf %30, %32 : vector<8x128xf32>
    %c0_15 = arith.constant 0 : index
    %c0_16 = arith.constant 0 : index
    %34 = vector.load %arg2[%c0_15, %c0_16] : memref<8x128xf32, #tpu.memory_space<vmem>>, vector<8x128xf32>
    %35 = arith.addf %34, %33 : vector<8x128xf32>
    %c0_17 = arith.constant 0 : index
    %c0_18 = arith.constant 0 : index
    %36 = vector.load %arg7[%c0_17, %c0_18] : memref<8x128xf32, #tpu.memory_space<vmem>>, vector<8x128xf32>
    tpu.vector_store %arg7[%c0_17, %c0_18], %35 {strides = array<i32>} : memref<8x128xf32, #tpu.memory_space<vmem>>, vector<8x128xf32>,
    return
  }
  func.func @transform_0(%arg0: i32, %arg1: i32) -> (i32, i32) {
    %c0_i32 = arith.constant 0 : i32
    %c0_i32_0 = arith.constant 0 : i32
    return %arg0, %c0_i32 : i32, i32
  }
  func.func @transform_1(%arg0: i32, %arg1: i32) -> (i32, i32) {
    %c0_i32 = arith.constant 0 : i32
    %c0_i32_0 = arith.constant 0 : i32
    %c0_i32_1 = arith.constant 0 : i32
    return %c0_i32, %c0_i32_0 : i32, i32
  }
  func.func @transform_2(%arg0: i32, %arg1: i32) -> (i32, i32) {
    %c0_i32 = arith.constant 0 : i32
    %c0_i32_0 = arith.constant 0 : i32
    %c0_i32_1 = arith.constant 0 : i32
    return %c0_i32, %c0_i32_0 : i32, i32
  }
  func.func @transform_3(%arg0: i32, %arg1: i32) -> (i32, i32) {
    %c0_i32 = arith.constant 0 : i32
    %c0_i32_0 = arith.constant 0 : i32
    %c0_i32_1 = arith.constant 0 : i32
    return %c0_i32, %c0_i32_0 : i32, i32
  }
  func.func @transform_4(%arg0: i32, %arg1: i32) -> (i32, i32) {
    %c0_i32 = arith.constant 0 : i32
    %c0_i32_0 = arith.constant 0 : i32
    %c0_i32_1 = arith.constant 0 : i32
    return %c0_i32, %c0_i32_0 : i32, i32
  }
  func.func @transform_5(%arg0: i32, %arg1: i32) -> (i32, i32) {
    %c0_i32 = arith.constant 0 : i32
    return %arg0, %arg1 : i32, i32
  }
}

</mosaic_0001>

<bundles_post_ra>
// kernel: tpu_custom_call.1
= control target key start
LH: loop header
LB: loop body
LE: loop exit
PB: predicated region body
PF: predicated region fallthrough
CT: control target
= control target key end

     0   :  { %s1024_s0 = inlined_call_operand.hbm [shape: f32[16,128], index: 0, kind: input, shape index: {}]   ;;  %s1025_s1 = inlined_call_operand.vmem [shape: f32[1,128], index: 1, kind: input, shape index: {}]   ;;  %s1026_s2 = inlined_call_operand.vmem [shape: f32[1,128], index: 2, kind: input, shape index: {}]   ;;  %s1027_s3 = inlined_call_operand.hbm [shape: f32[128,128], index: 3, kind: input, shape index: {}]   ;;  %s1028_s4 = inlined_call_operand.vmem [shape: f32[1,128], index: 4, kind: input, shape index: {}]   ;;  %s1029_s5 = inlined_call_operand.hbm [shape: f32[16,128], index: 5, kind: output, shape index: {}]  }
   0x1   :  { %1032 = sst [smem:[#allocation12_spill]] %s1027_s3 }
   0x2   :  { %10 = vsyncpa [#allocation3], 0 }
   0x3   :  { %12 = vsyncpa [#allocation3 + $0x1], 0 }
   0x4   :  { %13 = vsyncpa [#allocation6], 0 }
   0x5   :  { %14 = vsyncpa [#allocation4], 0 }
   0x6   :  { %16 = vsyncpa [#allocation4 + $0x1], 0  ;;  %s835_s18 = smov 0   ;;  %s837_s19 = smov 0  }
   0x7   :  { %s839_s20 = smov 0   ;;  %s841_s21 = smov 0  }
   0x8   :  { %s843_s22 = smov 0   ;;  %s845_s23 = smov 0  }
   0x9 LB: > { %s507_s24 = sadd.s32 4294967295, %s796_s23   ;;  %s508_s25 = sadd.s32 4294967294, %s796_s23   ;;  %s796_s23 = sphi %s845_s23, %s22_s23   ;;  %s792_s22 = sphi %s843_s22, %s1052_s22   ;;  %s788_s21 = sphi %s841_s21, %s1051_s21   ;;  %s784_s20 = sphi %s839_s20, %s1050_s20   ;;  %s780_s19 = sphi %s837_s19, %s1049_s19   ;;  %s776_s18 = sphi %s835_s18, %s1048_s18  }
   0xa   : > { %p54_p0 = scmp.ne.s32.totalorder %s780_s19, %s776_s18  ;;  %p869_p1 = scmp.eq.s32.totalorder %s507_s24, 0 }
   0xb   : > { %p873_p2 = scmp.eq.s32.totalorder %s507_s24, 1  ;;  %p170_p3 = scmp.eq.s32.totalorder %s508_s25, 1 }
   0xc   : > { %p879_p4 = por %p869_p1, %p54_p0  ;;  %p509_p5 = scmp.ge.s32.totalorder %s796_s23, 1 }
   0xd   : > { %p884_p6 = por %p170_p3, %p54_p0  ;;  %p177_p7 = scmp.lt.s32.totalorder %s796_s23, 3 }
   0xe   : > { %s1035_s28 = scalar_select %p879_p4, 1, 0 }
   0xf   : > { %s1036_s29 = scalar_select %p884_p6, 1, 0 }
  0x10   : > { %p889_p8 = pnand %p509_p5, %p177_p7  ;;  %s798_s6 = smov [#allocation5]  }
  0x11   : > { %s195_s7 = sshll.u32 %s798_s6, 4  ;;  %s34_s9 = sadd.s32 1, %s792_s22  ;;  %s196_s7 = int_to_ptr.vmem [resolvable:$true] %s195_s7 }
  0x12   : > { %p585_p9 = pneg %p889_p8  ;;  %s669_s10 = scalar_lea.vmem %s196_s7, 2048 }
  0x13   : > { %p670_p13 = scmp.ne.s32.totalorder %s196_s7, %s669_s10  ;;  %p677_p5 = scmp.lt.s32.totalorder %s196_s7, %s196_s7 }
  0x14   : > { %p898_p11 = pnand %p585_p9, %p869_p1  ;;  %p678_p7 = scmp.lt.s32.totalorder %s669_s10, %s669_s10 }
  0x16   : > { %p660_p12 = pneg %p898_p11  ;;  %p679_p6 = por %p678_p7, %p677_p5 }
  0x18   : > { %p672_p0 = pnand %p670_p13, %p660_p12 }
  0x1a   : > { %p673_p3 = pneg %p672_p0 }
  0x1c   : > { %p680_p4 = pnand %p679_p6, %p673_p3 }
  0x1e   : > { %683 = shalt.err (!%p680_p4)
}
  0x1f   : > { %s799_s11 = smov 128   ;;  %s800_s12 = smov 8  }
  0x20   : > { %s1039_s3 = sld [smem:[#allocation12_spill]]  ;;  %p36_p6 = scmp.ge.s32.totalorder %s34_s9, 2 }
  0x21   : > { %s41_s15 = sadd.s32 1, %s784_s20  ;;  %p48_p4 = scmp.ne.s32.totalorder %s784_s20, %s780_s19 }
  0x22   : > { %p49_p9 = scmp.eq.s32.totalorder %s796_s23, 0  ;;  %s1054_s9 = smov (%p36_p6, %s34_s9), 0 }
  0x23   : > { %1040 = sst [smem:[#allocation11_spill]] %s1054_s9  ;;  %p922_p13 = por %p873_p2, %p48_p4 }
  0x24   : > { %p916_p12 = por %p49_p9, %p48_p4  ;;  %s38_s24 = ssub.s32 %s792_s22, %s1054_s9 }
  0x25   : > { %p598_p0 = scmp.lt.s32.totalorder %s796_s23, 2  ;;  %s212_s25 = sand.u32 1, %s784_s20  }
  0x26   : > { %588 = dma.hbm_to_vmem [thread:$0]  (!%p898_p11), %s1039_s3, 2048, %s196_s7, [#allocation6], %s799_s11, %s799_s11, %s800_s12  }
  0x27   : > { %p39_p11 = scmp.eq.s32.totalorder %s38_s24, 0  ;;  %s512_s6 = sshll.u32 %s212_s25, 3 }
  0x28   : > { %s513_s8 = sshll.u32 %s792_s22, 7  ;;  %s216_s13 = scalar_lea.vmem [#allocation2], %s512_s6 }
  0x29   : > { %s931_s7 = scalar_select %p39_p11, %s784_s20, %s41_s15  }
  0x2a   : > { %s221_s12 = scalar_lea.hbm %s1024_s0, %s513_s8  ;;  %s223_s14 = sshll.u32 %s216_s13, 4  ;;  %s224_s14 = int_to_ptr.vmem [resolvable:$true] %s223_s14 }
  0x2b   : > { %p939_p2 = pnand %p598_p0, %p916_p12  ;;  %s213_s3 = scalar_lea.sflag [#allocation3], %s212_s25 }
  0x2c   : > { %s697_s24 = scalar_lea.vmem %s224_s14, 128  ;;  %s801_s15 = smov [#allocation2]  }
  0x2d   : > { %p686_p3 = pneg %p939_p2  ;;  %p698_p5 = scmp.ne.s32.totalorder %s224_s14, %s697_s24 }
  0x2e   : > { %s702_s9 = sshll.u32 %s801_s15, 4  ;;  %s703_s9 = int_to_ptr.vmem [resolvable:$false] %s702_s9 }
  0x2f   : > { %p700_p7 = pnand %p698_p5, %p686_p3  ;;  %s704_s8 = scalar_lea.vmem %s703_s9, 256 }
  0x30   : > { %p705_p4 = scmp.lt.s32.totalorder %s224_s14, %s703_s9  ;;  %p706_p9 = scmp.lt.s32.totalorder %s704_s8, %s697_s24 }
  0x31   : > { %p701_p6 = pneg %p700_p7 }
  0x32   : > { %p707_p11 = por %p706_p9, %p705_p4 }
  0x34   : > { %p708_p10 = pnand %p707_p11, %p701_p6 }
  0x36   : > { %711 = shalt.err (!%p708_p10)
}
  0x37   : > { %592 = dma.hbm_to_vmem [thread:$0]  (!%p939_p2), %s221_s12, 128, %s224_s14, %s213_s3  }
  0x38   : > { %232 = sbr.rel (%p889_p8) target bundleno = 600 (0x258), region = 40  ;;  %s950_s16 = sand.u32 (!%p889_p8), 1, %s780_s19  }
  0x39   : > { %s515_s25 = sshll.u32 (!%p889_p8), %s950_s16, 3  ;;  %s235_s6 = scalar_lea.sflag (!%p889_p8), [#allocation3], %s950_s16 }
  0x3a   : > { %s238_s9 = scalar_lea.vmem (!%p889_p8), [#allocation2], %s515_s25  ;;  %p1044_p12 = scmp.ne.s32.totalorder (!%p889_p8), %s1035_s28, 0 }
  0x3d   : > { %763 = dma.done.wait (%p1044_p12), %s235_s6, 128  }
  0x3e   : > { %765 = vsyncadd (%p1044_p12), %s235_s6, 4294967168 }
  0x3f   : > { %767 = dma.done.wait (%p869_p1), [#allocation6], 2048  }
  0x40   : > { %769 = vsyncadd (%p869_p1), [#allocation6], 4294965248  ;;  %v964_v0 = vld [vmem:[%s238_s9] sm:$0xff]  ;;  %v274_v1 = vlaneseq  ;;  %v802_v8 = vmov 0.0   ;;  %v321_v11 = vld [vmem:[#allocation5 + $0x68] sm:$0xff]  ;;  %vm803_vm1 = vmmov 0  }
  0x41   : > { %270 = vadd.xlane.f32.xlu0 %v964_v0  ;;  %542 = vmatprep.subr.mxu0 %v802_v8  ;;  %v323_v9 = vld [vmem:[#allocation5 + $0x78] sm:$0xff]  ;;  %v322_v10 = vld [vmem:[#allocation5 + $0x70] sm:$0xff]  ;;  %v320_v12 = vld [vmem:[#allocation5 + $0x60] sm:$0xff]  ;;  %s522_s12 = sshll.u32 %s788_s21, 7  ;;  %s268_s13 = scalar_lea.vmem [#allocation7], %s515_s25 }
  0x42   : > { %v275_v2 = vand.u32 127, %v274_v1  ;;  %543 = vmatpush3.msra.mxu0 %v323_v9  ;;  %v319_v13 = vld [vmem:[#allocation5 + $0x58] sm:$0xff]  ;;  %v318_v14 = vld [vmem:[#allocation5 + $0x50] sm:$0xff]  ;;  %v317_v15 = vld [vmem:[#allocation5 + $0x48] sm:$0xff]  ;;  %574 = vmatprep.mubr.msk.f32.mxu0 %vm803_vm1, %v802_v8  ;;  %s418_s14 = sshll.u32 %s268_s13, 4  ;;  %s416_s15 = scalar_lea.hbm %s1029_s5, %s522_s12  ;;  %s419_s14 = int_to_ptr.vmem [resolvable:$true] %s418_s14 }
  0x43   : > { %544 = vmatprep.subr.mxu0 %v802_v8  ;;  %v316_v16 = vld [vmem:[#allocation5 + $0x40] sm:$0xff]  ;;  %v315_v17 = vld [vmem:[#allocation5 + $0x38] sm:$0xff]  ;;  %v314_v18 = vld [vmem:[#allocation5 + $0x30] sm:$0xff]  ;;  %s404_s8 = scalar_lea.sflag [#allocation4], %s950_s16  ;;  %s712_s6 = scalar_lea.vmem %s419_s14, 128 }
  0x44   : > { %vm276_vm0 = vcmp.lt.s32.totalorder %v275_v2, 32  ;;  %545 = vmatpush3.msra.mxu0 %v322_v10  ;;  %v313_v19 = vld [vmem:[#allocation5 + $0x28] sm:$0xff]  ;;  %v312_v20 = vld [vmem:[#allocation5 + $0x20] sm:$0xff]  ;;  %v311_v21 = vld [vmem:[#allocation5 + $0x18] sm:$0xff]  ;;  %p713_p1 = scmp.ne.s32.totalorder %s419_s14, %s712_s6  ;;  %s804_s21 = smov [#allocation7]  }
  0x45   : > { %546 = vmatprep.subr.mxu0 %v802_v8  ;;  %v310_v22 = vld [vmem:[#allocation5 + $0x10] sm:$0xff]  ;;  %v309_v23 = vld [vmem:[#allocation5 + $0x8] sm:$0xff]  ;;  %v308_v24 = vld [vmem:[#allocation5] sm:$0xff]  ;;  %s716_s9 = sshll.u32 %s804_s21, 4  ;;  %s717_s9 = int_to_ptr.vmem [resolvable:$false] %s716_s9 }
  0x46   : > { %547 = vmatpush3.msra.mxu0 %v321_v11  ;;  %v518_v34 = vld [vmem:[%s1025_s1] ss:$0 sm:$0xff]  ;;  %p714_p8 = pnand %p713_p1, %p922_p13  ;;  %s718_s25 = scalar_lea.vmem %s717_s9, 256 }
  0x47   : > { %548 = vmatprep.subr.mxu0 %v802_v8  ;;  %v519_v36 = vld [vmem:[%s1026_s2] ss:$0 sm:$0xff]  ;;  %p719_p0 = scmp.lt.s32.totalorder %s419_s14, %s717_s9  ;;  %p720_p2 = scmp.lt.s32.totalorder %s718_s25, %s712_s6 }
  0x48   : > { %549 = vmatpush3.msra.mxu0 %v320_v12  ;;  %v520_v39 = vld [vmem:[%s1028_s4] ss:$0 sm:$0xff]  ;;  %p715_p10 = pneg %p714_p8 }
  0x49   : > { %550 = vmatprep.subr.mxu0 %v802_v8  ;;  %p721_p3 = por %p720_p2, %p719_p0 }
  0x4a   : > { %551 = vmatpush3.msra.mxu0 %v319_v13 }
  0x4b   : > { %552 = vmatprep.subr.mxu0 %v802_v8  ;;  %p722_p5 = pnand %p721_p3, %p715_p10 }
  0x4c   : > { %553 = vmatpush3.msra.mxu0 %v318_v14 }
  0x4d   : > { %554 = vmatprep.subr.mxu0 %v802_v8 }
  0x4e   : > { %555 = vmatpush3.msra.mxu0 %v317_v15 }
  0x4f   : > { %556 = vmatprep.subr.mxu0 %v802_v8 }
  0x50   : > { %557 = vmatpush3.msra.mxu0 %v316_v16 }
  0x51   : > { %558 = vmatprep.subr.mxu0 %v802_v8 }
  0x52   : > { %559 = vmatpush3.msra.mxu0 %v315_v17 }
  0x53   : > { %560 = vmatprep.subr.mxu0 %v802_v8 }
  0x54   : > { %561 = vmatpush3.msra.mxu0 %v314_v18 }
  0x55   : > { %562 = vmatprep.subr.mxu0 %v802_v8 }
  0x56   : > { %563 = vmatpush3.msra.mxu0 %v313_v19 }
  0x57   : > { %564 = vmatprep.subr.mxu0 %v802_v8 }
  0x58   : > { %565 = vmatpush3.msra.mxu0 %v312_v20 }
  0x59   : > { %566 = vmatprep.subr.mxu0 %v802_v8 }
  0x5a   : > { %567 = vmatpush3.msra.mxu0 %v311_v21 }
  0x5b   : > { %568 = vmatprep.subr.mxu0 %v802_v8 }
  0x5c   : > { %569 = vmatpush3.msra.mxu0 %v310_v22 }
  0x5d   : > { %570 = vmatprep.subr.mxu0 %v802_v8 }
  0x5e   : > { %571 = vmatpush3.msra.mxu0 %v309_v23 }
  0x5f   : > { %572 = vmatprep.subr.mxu0 %v802_v8 }
  0x60   : > { %573 = vmatpush3.msra.mxu0 %v308_v24 }
  0xca   : > { %v271_v3 = vpop.xlane.xlu0 %270 }
  0xcb   : > { %v272_v4 = vmul.f32 0.03125, %v271_v3 }
  0xcd   : > { %v968_v5 = vsub.f32 %v964_v0, %v272_v4 }
  0xcf   : > { %v277_v6 = vsel %vm276_vm0, %v968_v5, 0.0 }
  0xd0   : > { %v278_v7 = vmul.f32 %v277_v6, %v277_v6 }
  0xd2   : > { %279 = vadd.xlane.f32.xlu0 %v278_v7 }
 0x15b   : > { %v280_v25 = vpop.xlane.xlu0 %279 }
 0x15c   : > { %v281_v26 = vmul.f32 0.032258064, %v280_v25 }
 0x15e   : > { %654 = vrsqrt.f32 %v281_v26  ;;  %vm284_vm2 = vcmp.eq.f32.partialorder %v281_v26, inf  ;;  %v287_v29 = vand.u32 2147483648, %v281_v26  ;;  %vm286_vm3 = vcmp.eq.f32.partialorder %v281_v26, 0.0 }
 0x16b   : > { %v655_v27 = vpop.eup %654 }
 0x16c   : > { %v283_v28 = vmul.f32 %v655_v27, %v281_v26 }
 0x16e   : > { %v285_v30 = vsel %vm284_vm2, %v281_v26, %v283_v28 }
 0x16f   : > { %v288_v31 = vsel %vm286_vm3, %v287_v29, %v285_v30 }
 0x170   : > { %v289_v32 = vadd.f32 1e-06, %v288_v31 }
 0x172   : > { %656 = vrcp.f32 %v289_v32 }
 0x17f   : > { %v657_v33 = vpop.eup %656 }
 0x180   : > { %v292_v35 = vmul.f32 %v657_v33, %v968_v5 }
 0x182   : > { %v299_v37 = vmul.f32 %v518_v34, %v292_v35 }
 0x184   : > { %v307_v38 = vadd.f32 %v519_v36, %v299_v37 }
 0x186   : > { %575 = vmatmul.mubr.f32.vlgmr.msra.gmra.mxu0 %v307_v38 }
 0x246   : > { %v397_v40 = vpop.f32.mrf.mxu0 }
 0x247   : > { %v398_v41 = vadd.f32 %v520_v39, %v397_v40 }
 0x248   : > { %v576_v42 = vpop.f32.mrf.mxu0 }
 0x249   : > { %v401_v43 = vadd.f32 %v398_v41, %v964_v0 }
 0x24b   : > { %402 = vst [vmem:[%s268_s13] sm:$0xff] %v401_v43 }
 0x24c   : > { %725 = shalt.err (!%p722_p5)
}
 0x24d   : > { %s726_s3 = scalar_lea.hbm %s416_s15, 128  ;;  %s730_s28 = scalar_lea.hbm %s1029_s5, 256 }
 0x24e   : > { %p727_p7 = scmp.ne.s32.totalorder %s416_s15, %s726_s3  ;;  %p731_p9 = scmp.lt.s32.totalorder %s416_s15, %s1029_s5 }
 0x24f   : > { %p732_p11 = scmp.lt.s32.totalorder %s730_s28, %s726_s3 }
 0x250   : > { %p728_p6 = pnand %p727_p7, %p922_p13 }
 0x251   : > { %p733_p12 = por %p732_p11, %p731_p9 }
 0x252   : > { %p729_p4 = pneg %p728_p6 }
 0x254   : > { %p734_p1 = pnand %p733_p12, %p729_p4 }
 0x256   : > { %737 = shalt.err (!%p734_p1)
}
 0x257   : > { %583 = dma.vmem_to_hbm [thread:$0]  (%p922_p13), %s419_s14, 128, %s416_s15, %s404_s8  }
 0x258 PF: > { %s430_s11 = sand.u32 1, %s776_s18   ;;  %p1045_p8 = scmp.ne.s32.totalorder %s1036_s29, 0 }
 0x259   : > { %p1046_p10 = scmp.ge.s32.totalorder %s796_s23, 2  ;;  %s431_s12 = scalar_lea.sflag [#allocation4], %s430_s11 }
 0x25b   : > { %p594_p0 = pnand %p1046_p10, %p1045_p8 }
 0x25d   : > { %p595_p2 = pneg %p594_p0 }
 0x25f   : > { %771 = dma.done.wait (%p595_p2), %s431_s12, 128  }
 0x260   : > { %773 = vsyncadd (%p595_p2), %s431_s12, 4294967168  ;;  %s22_s23 = sadd.s32 1, %s796_s23   ;;  %s1047_s17 = sld [smem:[#allocation11_spill]] }
 0x261   : > { %p19_p3 = scmp.ge.s32.totalorder %s22_s23, 4   ;;  %s1048_s18 = smov %s780_s19 }
 0x262   : > { %s1049_s19 = smov %s784_s20  ;;  %s1050_s20 = smov %s931_s7 }
 0x263   : > { %s1051_s21 = smov %s792_s22  ;;  %21 = sbr.rel (!%p19_p3) target bundleno = 9 (0x9), region = 89 }
 0x266   : > { %s1052_s22 = smov %s1047_s17 }
 0x268   :  { %436 = vsyncpa [#allocation3], 1 }
 0x269   :  { %438 = vsyncpa [#allocation3 + $0x1], 1 }
 0x26a   :  { %439 = vsyncpa [#allocation6], 1 }
 0x26b   :  { %440 = vsyncpa [#allocation4], 1 }
 0x26c   :  { %442 = vsyncpa [#allocation4 + $0x1], 1 }

// kernel: tpu_custom_call.1
= control target key start
LH: loop header
LB: loop body
LE: loop exit
PB: predicated region body
PF: predicated region fallthrough
CT: control target
= control target key end

     0   :  { %s1024_s0 = inlined_call_operand.hbm [shape: f32[16,128], index: 0, kind: input, shape index: {}]   ;;  %s1025_s1 = inlined_call_operand.vmem [shape: f32[1,128], index: 1, kind: input, shape index: {}]   ;;  %s1026_s2 = inlined_call_operand.vmem [shape: f32[1,128], index: 2, kind: input, shape index: {}]   ;;  %s1027_s3 = inlined_call_operand.hbm [shape: f32[128,128], index: 3, kind: input, shape index: {}]   ;;  %s1028_s4 = inlined_call_operand.vmem [shape: f32[1,128], index: 4, kind: input, shape index: {}]   ;;  %s1029_s5 = inlined_call_operand.hbm [shape: f32[16,128], index: 5, kind: output, shape index: {}]  }
   0x1   :  { %1032 = sst [smem:[#allocation12_spill]] %s1027_s3 }
   0x2   :  { %10 = vsyncpa [#allocation3], 0 }
   0x3   :  { %12 = vsyncpa [#allocation3 + $0x1], 0 }
   0x4   :  { %13 = vsyncpa [#allocation6], 0 }
   0x5   :  { %14 = vsyncpa [#allocation4], 0 }
   0x6   :  { %16 = vsyncpa [#allocation4 + $0x1], 0  ;;  %s835_s18 = smov 0   ;;  %s837_s19 = smov 0  }
   0x7   :  { %s839_s20 = smov 0   ;;  %s841_s21 = smov 0  }
   0x8   :  { %s843_s22 = smov 0   ;;  %s845_s23 = smov 0  }
   0x9 LB: > { %s507_s24 = sadd.s32 4294967295, %s796_s23   ;;  %s508_s25 = sadd.s32 4294967294, %s796_s23   ;;  %s796_s23 = sphi %s845_s23, %s22_s23   ;;  %s792_s22 = sphi %s843_s22, %s1052_s22   ;;  %s788_s21 = sphi %s841_s21, %s1051_s21   ;;  %s784_s20 = sphi %s839_s20, %s1050_s20   ;;  %s780_s19 = sphi %s837_s19, %s1049_s19   ;;  %s776_s18 = sphi %s835_s18, %s1048_s18  }
   0xa   : > { %p54_p0 = scmp.ne.s32.totalorder %s780_s19, %s776_s18  ;;  %p869_p1 = scmp.eq.s32.totalorder %s507_s24, 0 }
   0xb   : > { %p873_p2 = scmp.eq.s32.totalorder %s507_s24, 1  ;;  %p170_p3 = scmp.eq.s32.totalorder %s508_s25, 1 }
   0xc   : > { %p879_p4 = por %p869_p1, %p54_p0  ;;  %p509_p5 = scmp.ge.s32.totalorder %s796_s23, 1 }
   0xd   : > { %p884_p6 = por %p170_p3, %p54_p0  ;;  %p177_p7 = scmp.lt.s32.totalorder %s796_s23, 3 }
   0xe   : > { %s1035_s28 = scalar_select %p879_p4, 1, 0 }
   0xf   : > { %s1036_s29 = scalar_select %p884_p6, 1, 0 }
  0x10   : > { %p889_p8 = pnand %p509_p5, %p177_p7  ;;  %s798_s6 = smov [#allocation5]  }
  0x11   : > { %s195_s7 = sshll.u32 %s798_s6, 4  ;;  %s34_s9 = sadd.s32 1, %s792_s22  ;;  %s196_s7 = int_to_ptr.vmem [resolvable:$true] %s195_s7 }
  0x12   : > { %p585_p9 = pneg %p889_p8  ;;  %s669_s10 = scalar_lea.vmem %s196_s7, 2048 }
  0x13   : > { %p670_p13 = scmp.ne.s32.totalorder %s196_s7, %s669_s10  ;;  %p677_p5 = scmp.lt.s32.totalorder %s196_s7, %s196_s7 }
  0x14   : > { %p898_p11 = pnand %p585_p9, %p869_p1  ;;  %p678_p7 = scmp.lt.s32.totalorder %s669_s10, %s669_s10 }
  0x16   : > { %p660_p12 = pneg %p898_p11  ;;  %p679_p6 = por %p678_p7, %p677_p5 }
  0x18   : > { %p672_p0 = pnand %p670_p13, %p660_p12 }
  0x1a   : > { %p673_p3 = pneg %p672_p0 }
  0x1c   : > { %p680_p4 = pnand %p679_p6, %p673_p3 }
  0x1e   : > { %683 = shalt.err (!%p680_p4)
}
  0x1f   : > { %s799_s11 = smov 128   ;;  %s800_s12 = smov 8  }
  0x20   : > { %s1039_s3 = sld [smem:[#allocation12_spill]]  ;;  %p36_p6 = scmp.ge.s32.totalorder %s34_s9, 2 }
  0x21   : > { %s41_s15 = sadd.s32 1, %s784_s20  ;;  %p48_p4 = scmp.ne.s32.totalorder %s784_s20, %s780_s19 }
  0x22   : > { %p49_p9 = scmp.eq.s32.totalorder %s796_s23, 0  ;;  %s1054_s9 = smov (%p36_p6, %s34_s9), 0 }
  0x23   : > { %1040 = sst [smem:[#allocation11_spill]] %s1054_s9  ;;  %p922_p13 = por %p873_p2, %p48_p4 }
  0x24   : > { %p916_p12 = por %p49_p9, %p48_p4  ;;  %s38_s24 = ssub.s32 %s792_s22, %s1054_s9 }
  0x25   : > { %p598_p0 = scmp.lt.s32.totalorder %s796_s23, 2  ;;  %s212_s25 = sand.u32 1, %s784_s20  }
  0x26   : > { %588 = dma.hbm_to_vmem [thread:$0]  (!%p898_p11), %s1039_s3, 2048, %s196_s7, [#allocation6], %s799_s11, %s799_s11, %s800_s12  }
  0x27   : > { %p39_p11 = scmp.eq.s32.totalorder %s38_s24, 0  ;;  %s512_s6 = sshll.u32 %s212_s25, 3 }
  0x28   : > { %s513_s8 = sshll.u32 %s792_s22, 7  ;;  %s216_s13 = scalar_lea.vmem [#allocation2], %s512_s6 }
  0x29   : > { %s931_s7 = scalar_select %p39_p11, %s784_s20, %s41_s15  }
  0x2a   : > { %s221_s12 = scalar_lea.hbm %s1024_s0, %s513_s8  ;;  %s223_s14 = sshll.u32 %s216_s13, 4  ;;  %s224_s14 = int_to_ptr.vmem [resolvable:$true] %s223_s14 }
  0x2b   : > { %p939_p2 = pnand %p598_p0, %p916_p12  ;;  %s213_s3 = scalar_lea.sflag [#allocation3], %s212_s25 }
  0x2c   : > { %s697_s24 = scalar_lea.vmem %s224_s14, 128  ;;  %s801_s15 = smov [#allocation2]  }
  0x2d   : > { %p686_p3 = pneg %p939_p2  ;;  %p698_p5 = scmp.ne.s32.totalorder %s224_s14, %s697_s24 }
  0x2e   : > { %s702_s9 = sshll.u32 %s801_s15, 4  ;;  %s703_s9 = int_to_ptr.vmem [resolvable:$false] %s702_s9 }
  0x2f   : > { %p700_p7 = pnand %p698_p5, %p686_p3  ;;  %s704_s8 = scalar_lea.vmem %s703_s9, 256 }
  0x30   : > { %p705_p4 = scmp.lt.s32.totalorder %s224_s14, %s703_s9  ;;  %p706_p9 = scmp.lt.s32.totalorder %s704_s8, %s697_s24 }
  0x31   : > { %p701_p6 = pneg %p700_p7 }
  0x32   : > { %p707_p11 = por %p706_p9, %p705_p4 }
  0x34   : > { %p708_p10 = pnand %p707_p11, %p701_p6 }
  0x36   : > { %711 = shalt.err (!%p708_p10)
}
  0x37   : > { %592 = dma.hbm_to_vmem [thread:$0]  (!%p939_p2), %s221_s12, 128, %s224_s14, %s213_s3  }
  0x38   : > { %232 = sbr.rel (%p889_p8) target bundleno = 600 (0x258), region = 40  ;;  %s950_s16 = sand.u32 (!%p889_p8), 1, %s780_s19  }
  0x39   : > { %s515_s25 = sshll.u32 (!%p889_p8), %s950_s16, 3  ;;  %s235_s6 = scalar_lea.sflag (!%p889_p8), [#allocation3], %s950_s16 }
  0x3a   : > { %s238_s9 = scalar_lea.vmem (!%p889_p8), [#allocation2], %s515_s25  ;;  %p1044_p12 = scmp.ne.s32.totalorder (!%p889_p8), %s1035_s28, 0 }
  0x3d   : > { %763 = dma.done.wait (%p1044_p12), %s235_s6, 128  }
  0x3e   : > { %765 = vsyncadd (%p1044_p12), %s235_s6, 4294967168 }
  0x3f   : > { %767 = dma.done.wait (%p869_p1), [#allocation6], 2048  }
  0x40   : > { %769 = vsyncadd (%p869_p1), [#allocation6], 4294965248  ;;  %v964_v0 = vld [vmem:[%s238_s9] sm:$0xff]  ;;  %v274_v1 = vlaneseq  ;;  %v802_v8 = vmov 0.0   ;;  %v321_v11 = vld [vmem:[#allocation5 + $0x68] sm:$0xff]  ;;  %vm803_vm1 = vmmov 0  }
  0x41   : > { %270 = vadd.xlane.f32.xlu0 %v964_v0  ;;  %542 = vmatprep.subr.mxu0 %v802_v8  ;;  %v323_v9 = vld [vmem:[#allocation5 + $0x78] sm:$0xff]  ;;  %v322_v10 = vld [vmem:[#allocation5 + $0x70] sm:$0xff]  ;;  %v320_v12 = vld [vmem:[#allocation5 + $0x60] sm:$0xff]  ;;  %s522_s12 = sshll.u32 %s788_s21, 7  ;;  %s268_s13 = scalar_lea.vmem [#allocation7], %s515_s25 }
  0x42   : > { %v275_v2 = vand.u32 127, %v274_v1  ;;  %543 = vmatpush3.msra.mxu0 %v323_v9  ;;  %v319_v13 = vld [vmem:[#allocation5 + $0x58] sm:$0xff]  ;;  %v318_v14 = vld [vmem:[#allocation5 + $0x50] sm:$0xff]  ;;  %v317_v15 = vld [vmem:[#allocation5 + $0x48] sm:$0xff]  ;;  %574 = vmatprep.mubr.msk.f32.mxu0 %vm803_vm1, %v802_v8  ;;  %s418_s14 = sshll.u32 %s268_s13, 4  ;;  %s416_s15 = scalar_lea.hbm %s1029_s5, %s522_s12  ;;  %s419_s14 = int_to_ptr.vmem [resolvable:$true] %s418_s14 }
  0x43   : > { %544 = vmatprep.subr.mxu0 %v802_v8  ;;  %v316_v16 = vld [vmem:[#allocation5 + $0x40] sm:$0xff]  ;;  %v315_v17 = vld [vmem:[#allocation5 + $0x38] sm:$0xff]  ;;  %v314_v18 = vld [vmem:[#allocation5 + $0x30] sm:$0xff]  ;;  %s404_s8 = scalar_lea.sflag [#allocation4], %s950_s16  ;;  %s712_s6 = scalar_lea.vmem %s419_s14, 128 }
  0x44   : > { %vm276_vm0 = vcmp.lt.s32.totalorder %v275_v2, 32  ;;  %545 = vmatpush3.msra.mxu0 %v322_v10  ;;  %v313_v19 = vld [vmem:[#allocation5 + $0x28] sm:$0xff]  ;;  %v312_v20 = vld [vmem:[#allocation5 + $0x20] sm:$0xff]  ;;  %v311_v21 = vld [vmem:[#allocation5 + $0x18] sm:$0xff]  ;;  %p713_p1 = scmp.ne.s32.totalorder %s419_s14, %s712_s6  ;;  %s804_s21 = smov [#allocation7]  }
  0x45   : > { %546 = vmatprep.subr.mxu0 %v802_v8  ;;  %v310_v22 = vld [vmem:[#allocation5 + $0x10] sm:$0xff]  ;;  %v309_v23 = vld [vmem:[#allocation5 + $0x8] sm:$0xff]  ;;  %v308_v24 = vld [vmem:[#allocation5] sm:$0xff]  ;;  %s716_s9 = sshll.u32 %s804_s21, 4  ;;  %s717_s9 = int_to_ptr.vmem [resolvable:$false] %s716_s9 }
  0x46   : > { %547 = vmatpush3.msra.mxu0 %v321_v11  ;;  %v518_v34 = vld [vmem:[%s1025_s1] ss:$0 sm:$0xff]  ;;  %p714_p8 = pnand %p713_p1, %p922_p13  ;;  %s718_s25 = scalar_lea.vmem %s717_s9, 256 }
  0x47   : > { %548 = vmatprep.subr.mxu0 %v802_v8  ;;  %v519_v36 = vld [vmem:[%s1026_s2] ss:$0 sm:$0xff]  ;;  %p719_p0 = scmp.lt.s32.totalorder %s419_s14, %s717_s9  ;;  %p720_p2 = scmp.lt.s32.totalorder %s718_s25, %s712_s6 }
  0x48   : > { %549 = vmatpush3.msra.mxu0 %v320_v12  ;;  %v520_v39 = vld [vmem:[%s1028_s4] ss:$0 sm:$0xff]  ;;  %p715_p10 = pneg %p714_p8 }
  0x49   : > { %550 = vmatprep.subr.mxu0 %v802_v8  ;;  %p721_p3 = por %p720_p2, %p719_p0 }
  0x4a   : > { %551 = vmatpush3.msra.mxu0 %v319_v13 }
  0x4b   : > { %552 = vmatprep.subr.mxu0 %v802_v8  ;;  %p722_p5 = pnand %p721_p3, %p715_p10 }
  0x4c   : > { %553 = vmatpush3.msra.mxu0 %v318_v14 }
  0x4d   : > { %554 = vmatprep.subr.mxu0 %v802_v8 }
  0x4e   : > { %555 = vmatpush3.msra.mxu0 %v317_v15 }
  0x4f   : > { %556 = vmatprep.subr.mxu0 %v802_v8 }
  0x50   : > { %557 = vmatpush3.msra.mxu0 %v316_v16 }
  0x51   : > { %558 = vmatprep.subr.mxu0 %v802_v8 }
  0x52   : > { %559 = vmatpush3.msra.mxu0 %v315_v17 }
  0x53   : > { %560 = vmatprep.subr.mxu0 %v802_v8 }
  0x54   : > { %561 = vmatpush3.msra.mxu0 %v314_v18 }
  0x55   : > { %562 = vmatprep.subr.mxu0 %v802_v8 }
  0x56   : > { %563 = vmatpush3.msra.mxu0 %v313_v19 }
  0x57   : > { %564 = vmatprep.subr.mxu0 %v802_v8 }
  0x58   : > { %565 = vmatpush3.msra.mxu0 %v312_v20 }
  0x59   : > { %566 = vmatprep.subr.mxu0 %v802_v8 }
  0x5a   : > { %567 = vmatpush3.msra.mxu0 %v311_v21 }
  0x5b   : > { %568 = vmatprep.subr.mxu0 %v802_v8 }
  0x5c   : > { %569 = vmatpush3.msra.mxu0 %v310_v22 }
  0x5d   : > { %570 = vmatprep.subr.mxu0 %v802_v8 }
  0x5e   : > { %571 = vmatpush3.msra.mxu0 %v309_v23 }
  0x5f   : > { %572 = vmatprep.subr.mxu0 %v802_v8 }
  0x60   : > { %573 = vmatpush3.msra.mxu0 %v308_v24 }
  0xca   : > { %v271_v3 = vpop.xlane.xlu0 %270 }
  0xcb   : > { %v272_v4 = vmul.f32 0.03125, %v271_v3 }
  0xcd   : > { %v968_v5 = vsub.f32 %v964_v0, %v272_v4 }
  0xcf   : > { %v277_v6 = vsel %vm276_vm0, %v968_v5, 0.0 }
  0xd0   : > { %v278_v7 = vmul.f32 %v277_v6, %v277_v6 }
  0xd2   : > { %279 = vadd.xlane.f32.xlu0 %v278_v7 }
 0x15b   : > { %v280_v25 = vpop.xlane.xlu0 %279 }
 0x15c   : > { %v281_v26 = vmul.f32 0.032258064, %v280_v25 }
 0x15e   : > { %654 = vrsqrt.f32 %v281_v26  ;;  %vm284_vm2 = vcmp.eq.f32.partialorder %v281_v26, inf  ;;  %v287_v29 = vand.u32 2147483648, %v281_v26  ;;  %vm286_vm3 = vcmp.eq.f32.partialorder %v281_v26, 0.0 }
 0x16b   : > { %v655_v27 = vpop.eup %654 }
 0x16c   : > { %v283_v28 = vmul.f32 %v655_v27, %v281_v26 }
 0x16e   : > { %v285_v30 = vsel %vm284_vm2, %v281_v26, %v283_v28 }
 0x16f   : > { %v288_v31 = vsel %vm286_vm3, %v287_v29, %v285_v30 }
 0x170   : > { %v289_v32 = vadd.f32 1e-06, %v288_v31 }
 0x172   : > { %656 = vrcp.f32 %v289_v32 }
 0x17f   : > { %v657_v33 = vpop.eup %656 }
 0x180   : > { %v292_v35 = vmul.f32 %v657_v33, %v968_v5 }
 0x182   : > { %v299_v37 = vmul.f32 %v518_v34, %v292_v35 }
 0x184   : > { %v307_v38 = vadd.f32 %v519_v36, %v299_v37 }
 0x186   : > { %575 = vmatmul.mubr.f32.vlgmr.msra.gmra.mxu0 %v307_v38 }
 0x246   : > { %v397_v40 = vpop.f32.mrf.mxu0 }
 0x247   : > { %v398_v41 = vadd.f32 %v520_v39, %v397_v40 }
 0x248   : > { %v576_v42 = vpop.f32.mrf.mxu0 }
 0x249   : > { %v401_v43 = vadd.f32 %v398_v41, %v964_v0 }
 0x24b   : > { %402 = vst [vmem:[%s268_s13] sm:$0xff] %v401_v43 }
 0x24c   : > { %725 = shalt.err (!%p722_p5)
}
 0x24d   : > { %s726_s3 = scalar_lea.hbm %s416_s15, 128  ;;  %s730_s28 = scalar_lea.hbm %s1029_s5, 256 }
 0x24e   : > { %p727_p7 = scmp.ne.s32.totalorder %s416_s15, %s726_s3  ;;  %p731_p9 = scmp.lt.s32.totalorder %s416_s15, %s1029_s5 }
 0x24f   : > { %p732_p11 = scmp.lt.s32.totalorder %s730_s28, %s726_s3 }
 0x250   : > { %p728_p6 = pnand %p727_p7, %p922_p13 }
 0x251   : > { %p733_p12 = por %p732_p11, %p731_p9 }
 0x252   : > { %p729_p4 = pneg %p728_p6 }
 0x254   : > { %p734_p1 = pnand %p733_p12, %p729_p4 }
 0x256   : > { %737 = shalt.err (!%p734_p1)
}
 0x257   : > { %583 = dma.vmem_to_hbm [thread:$0]  (%p922_p13), %s419_s14, 128, %s416_s15, %s404_s8  }
 0x258 PF: > { %s430_s11 = sand.u32 1, %s776_s18   ;;  %p1045_p8 = scmp.ne.s32.totalorder %s1036_s29, 0 }
 0x259   : > { %p1046_p10 = scmp.ge.s32.totalorder %s796_s23, 2  ;;  %s431_s12 = scalar_lea.sflag [#allocation4], %s430_s11 }
 0x25b   : > { %p594_p0 = pnand %p1046_p10, %p1045_p8 }
 0x25d   : > { %p595_p2 = pneg %p594_p0 }
 0x25f   : > { %771 = dma.done.wait (%p595_p2), %s431_s12, 128  }
 0x260   : > { %773 = vsyncadd (%p595_p2), %s431_s12, 4294967168  ;;  %s22_s23 = sadd.s32 1, %s796_s23   ;;  %s1047_s17 = sld [smem:[#allocation11_spill]] }
 0x261   : > { %p19_p3 = scmp.ge.s32.totalorder %s22_s23, 4   ;;  %s1048_s18 = smov %s780_s19 }
 0x262   : > { %s1049_s19 = smov %s784_s20  ;;  %s1050_s20 = smov %s931_s7 }
 0x263   : > { %s1051_s21 = smov %s792_s22  ;;  %21 = sbr.rel (!%p19_p3) target bundleno = 9 (0x9), region = 89 }
 0x266   : > { %s1052_s22 = smov %s1047_s17 }
 0x268   :  { %436 = vsyncpa [#allocation3], 1 }
 0x269   :  { %438 = vsyncpa [#allocation3 + $0x1], 1 }
 0x26a   :  { %439 = vsyncpa [#allocation6], 1 }
 0x26b   :  { %440 = vsyncpa [#allocation4], 1 }
 0x26c   :  { %442 = vsyncpa [#allocation4 + $0x1], 1 }

</bundles_post_ra>
